<compile_context>
chip_gen: v6e
topology: v6e:2x2x1
jax: 0.10.0
libtpu: 0.0.40
codegen_flags: <defaults>
</compile_context>

<pallas_src>
import collections

import jax
import jax.numpy as jnp
import numpy as np
from jax.experimental import pallas as pl
from jax.experimental.pallas import tpu as pltpu

IRREPS_IN = [(8, 0), (4, 1)]     # (multiplicity, l), all even parity
IRREPS_OUT = [(16, 0), (8, 1)]

_LANE = 128
_SUBLANE = 8


def _dims(irreps):
    return sum(m * (2 * l + 1) for m, l in irreps)


def _round_up(v, m):
    return ((v + m - 1) // m) * m


# ---------------------------------------------------------------------------
# Parameter construction (done once; all layout plumbing hoisted out of the
# per-call wrappers).
# ---------------------------------------------------------------------------
Params = collections.namedtuple("Params", ["w", "w_t", "b_row", "b_col"])


def build_raw_params(key):
    """Dense block-diagonal weight (D_in, D_out) and bias (D_out,) as numpy f32."""
    d_in, d_out = _dims(IRREPS_IN), _dims(IRREPS_OUT)
    w_full = np.zeros((d_in, d_out), dtype=np.float32)
    keys = jax.random.split(key, len(IRREPS_IN))
    off_in = 0
    for (mul_in, l_in), k in zip(IRREPS_IN, keys):
        dim_in = mul_in * (2 * l_in + 1)
        off_out = 0
        for (mul_out, l_out) in IRREPS_OUT:
            dim_out = mul_out * (2 * l_out + 1)
            if l_in == l_out:  # only matching irreps couple through 1x0e
                sqrt_k = 1.0 / np.sqrt(mul_in)  # fan_in = mul_in (rescale=True)
                w_l = np.asarray(jax.random.normal(k, (mul_in, mul_out), jnp.float32))
                w_l = w_l * sqrt_k
                # out[w*(2l+1)+m] += W_l[u, w] * x[u*(2l+1)+m]
                block = np.kron(w_l, np.eye(2 * l_in + 1, dtype=np.float32))
                w_full[off_in:off_in + dim_in, off_out:off_out + dim_out] = block
            off_out += dim_out
        off_in += dim_in

    # Bias exists only for 0e output slices (the torch module initializes it to
    # zeros; small deterministic non-zero values here so the bias path is
    # exercised — placement matches the module exactly).
    bias = np.zeros((d_out,), dtype=np.float32)
    off_out = 0
    for (mul_out, l_out) in IRREPS_OUT:
        dim_out = mul_out * (2 * l_out + 1)
        if l_out == 0:
            bias[off_out:off_out + dim_out] = 0.01 * np.arange(mul_out, dtype=np.float32)
        off_out += dim_out
    return w_full, bias


def prepare_params(w_full, bias, compute_dtype=jnp.float32):
    """Precompute W, W^T and reshaped f32 biases once (no per-call transposes)."""
    return Params(
        w=jnp.asarray(w_full, compute_dtype),
        w_t=jnp.asarray(np.ascontiguousarray(w_full.T), compute_dtype),
        b_row=jnp.asarray(bias.reshape(1, -1), jnp.float32),
        b_col=jnp.asarray(bias.reshape(-1, 1), jnp.float32),
    )


# ---------------------------------------------------------------------------
# Tile pickers: large tiles (multi-MB per step) so the ~0.35 us per-step
# pipeline overhead is amortized, >=4 steps at large N for megacore balance,
# VMEM-safe caps that account for lane/sublane padding.
# ---------------------------------------------------------------------------
def _pick_col_tile(n, *, target_steps=4, max_tile=32 * 1024, min_tile=2048):
    n_pad = _round_up(max(n, 1), _LANE)
    if n_pad <= min_tile:
        return n_pad
    tile = _round_up(pl.cdiv(n_pad, target_steps), _LANE)
    return max(min_tile, min(tile, max_tile, n_pad))


def _pick_row_tile(n, *, target_steps=4, max_tile=8 * 1024, min_tile=1024):
    # max_tile=8K: row-major tiles are lane-padded to 128 wide in VMEM, so the
    # double-buffered f32 footprint at 8K rows is ~16 MiB (safe on v7x).
    n_pad = _round_up(max(n, 1), _SUBLANE)
    if n_pad <= min_tile:
        return n_pad
    tile = _round_up(pl.cdiv(n_pad, target_steps), _SUBLANE)
    return max(min_tile, min(tile, max_tile, n_pad))


# ---------------------------------------------------------------------------
# PRIMARY: lane-dense (feature-major) orientation.
#   x^T (D_in, N) -> out^T (D_out, N); N on the 128-lane axis.
# Only use this when the producer already emits (D_in, N); do not pay a
# caller-side transpose to feed it.
# ---------------------------------------------------------------------------
def _linear_rs_t_kernel(xt_ref, wt_ref, b_ref, o_ref):
    acc = jnp.dot(wt_ref[...], xt_ref[...], preferred_element_type=jnp.float32)
    o_ref[...] = (acc + b_ref[...]).astype(o_ref.dtype)


def linear_rs_lane_dense(x_t, params, *, col_tile=None):
    d_in, n = x_t.shape
    d_out = params.w_t.shape[0]
    if col_tile is None:
        col_tile = _pick_col_tile(n)
    col_tile = min(col_tile, _round_up(n, _LANE))
    grid = (pl.cdiv(n, col_tile),)
    return pl.pallas_call(
        _linear_rs_t_kernel,
        out_shape=jax.ShapeDtypeStruct((d_out, n), x_t.dtype),
        grid_spec=pltpu.PrefetchScalarGridSpec(
            num_scalar_prefetch=0,
            grid=grid,
            in_specs=[
                pl.BlockSpec((d_in, col_tile), lambda i: (0, i)),   # x^T col tile
                pl.BlockSpec((d_out, d_in), lambda i: (0, 0)),      # resident W^T
                pl.BlockSpec((d_out, 1), lambda i: (0, 0)),         # resident bias
            ],
            out_specs=pl.BlockSpec((d_out, col_tile), lambda i: (0, i)),
        ),
        compiler_params=pltpu.CompilerParams(
            dimension_semantics=("parallel",)),
    )(x_t, params.w_t, params.b_col)


# ---------------------------------------------------------------------------
# FALLBACK: row-major orientation, matches the module's native (N, D) layout.
# ---------------------------------------------------------------------------
def _linear_rs_kernel(x_ref, w_ref, b_ref, o_ref):
    acc = jnp.dot(x_ref[...], w_ref[...], preferred_element_type=jnp.float32)
    o_ref[...] = (acc + b_ref[...]).astype(o_ref.dtype)


def linear_rs(x, params, *, row_tile=None):
    n, d_in = x.shape
    d_out = params.w.shape[1]
    if row_tile is None:
        row_tile = _pick_row_tile(n)
    row_tile = min(row_tile, _round_up(n, _SUBLANE))
    grid = (pl.cdiv(n, row_tile),)
    return pl.pallas_call(
        _linear_rs_kernel,
        out_shape=jax.ShapeDtypeStruct((n, d_out), x.dtype),
        grid_spec=pltpu.PrefetchScalarGridSpec(
            num_scalar_prefetch=0,
            grid=grid,
            in_specs=[
                pl.BlockSpec((row_tile, d_in), lambda i: (i, 0)),   # x row tile
                pl.BlockSpec((d_in, d_out), lambda i: (0, 0)),      # resident W
                pl.BlockSpec((1, d_out), lambda i: (0, 0)),         # resident bias
            ],
            out_specs=pl.BlockSpec((row_tile, d_out), lambda i: (i, 0)),
        ),
        compiler_params=pltpu.CompilerParams(
            dimension_semantics=("parallel",)),
    )(x, params.w, params.b_row)


if __name__ == "__main__":
    key = jax.random.PRNGKey(0)
    kx, kw = jax.random.split(key)
    d_in, d_out = _dims(IRREPS_IN), _dims(IRREPS_OUT)
    n = 512  # small test size

    w_np, b_np = build_raw_params(kw)
    params_f32 = prepare_params(w_np, b_np, jnp.float32)
    params_bf16 = prepare_params(w_np, b_np, jnp.bfloat16)

    x_f32 = jax.random.normal(kx, (n, d_in), jnp.float32)
    ref_f32 = np.asarray(x_f32 @ params_f32.w + jnp.asarray(b_np)[None, :])

    # 1) Primary lane-dense path, f32 (exact module numerics).  The (D_in, N)
    #    input is constructed directly here; in a real pipeline the producer
    #    should emit this layout (a caller-side x.T would cost an extra HBM
    #    round trip of x).
    x_t_f32 = jnp.asarray(np.ascontiguousarray(np.asarray(x_f32).T))
    out_t = jax.block_until_ready(linear_rs_lane_dense(x_t_f32, params_f32))
    assert out_t.shape == (d_out, n)
    np.testing.assert_allclose(np.asarray(out_t).T, ref_f32, rtol=1e-5, atol=1e-5)

    # 2) Row-major compatibility fallback, f32.
    out_rm = jax.block_until_ready(linear_rs(x_f32, params_f32))
    assert out_rm.shape == (n, d_out)
    np.testing.assert_allclose(np.asarray(out_rm), ref_f32, rtol=1e-5, atol=1e-5)

    # 3) bf16 I/O fast path (f32 accumulation + bias add in-kernel; does not
    #    bit-match the f32 path).
    x_bf16 = x_f32.astype(jnp.bfloat16)
    ref_bf16 = np.asarray(x_bf16.astype(jnp.float32) @ params_bf16.w.astype(jnp.float32)
                          + jnp.asarray(b_np)[None, :])
    out_bf16 = jax.block_until_ready(linear_rs(x_bf16, params_bf16))
    np.testing.assert_allclose(np.asarray(out_bf16).astype(np.float32),
                               ref_bf16, rtol=2e-2, atol=2e-2)
    x_t_bf16 = jnp.asarray(np.ascontiguousarray(np.asarray(x_bf16).T))
    out_t_bf16 = jax.block_until_ready(linear_rs_lane_dense(x_t_bf16, params_bf16))
    np.testing.assert_allclose(np.asarray(out_t_bf16).T.astype(np.float32),
                               ref_bf16, rtol=2e-2, atol=2e-2)

    # 4) Ragged N (not a multiple of 8/128): exercises partial last blocks.
    n2 = 200
    x2 = jax.random.normal(jax.random.PRNGKey(1), (n2, d_in), jnp.float32)
    ref2 = np.asarray(x2 @ params_f32.w + jnp.asarray(b_np)[None, :])
    out2_rm = jax.block_until_ready(linear_rs(x2, params_f32))
    np.testing.assert_allclose(np.asarray(out2_rm), ref2, rtol=1e-5, atol=1e-5)
    x2_t = jnp.asarray(np.ascontiguousarray(np.asarray(x2).T))
    out2_t = jax.block_until_ready(linear_rs_lane_dense(x2_t, params_f32))
    np.testing.assert_allclose(np.asarray(out2_t).T, ref2, rtol=1e-5, atol=1e-5)

    print("KERNEL_OK")
</pallas_src>

<mosaic_0001>
module attributes {stable_mosaic.version = 11 : i64} {
  func.func @_linear_rs_t_kernel(%arg0: i32, %arg1: memref<20x512xf32, #tpu.memory_space<vmem>>, %arg2: memref<40x20xf32, #tpu.memory_space<vmem>>, %arg3: memref<40x1xf32, #tpu.memory_space<vmem>>, %arg4: memref<40x512xf32, #tpu.memory_space<vmem>>) attributes {dimension_semantics = [#tpu.dimension_semantics<parallel>], iteration_bounds = array<i64: 1>, scalar_prefetch = 0 : i64, scratch_operands = 0 : i64, tpu.core_type = #tpu.core_type<tc>, window_params = [{transform_indices = @transform_0, window_bounds = array<i64: 20, 512>}, {pipeline_mode = #tpu.pipeline_mode<synchronous>, transform_indices = @transform_1, window_bounds = array<i64: 40, 20>}, {pipeline_mode = #tpu.pipeline_mode<synchronous>, transform_indices = @transform_2, window_bounds = array<i64: 40, 1>}, {transform_indices = @transform_3, window_bounds = array<i64: 40, 512>}]} {
    %c0 = arith.constant 0 : index
    %c0_0 = arith.constant 0 : index
    %0 = vector.load %arg2[%c0, %c0_0] : memref<40x20xf32, #tpu.memory_space<vmem>>, vector<40x20xf32>
    %c0_1 = arith.constant 0 : index
    %c0_2 = arith.constant 0 : index
    %1 = vector.load %arg1[%c0_1, %c0_2] : memref<20x512xf32, #tpu.memory_space<vmem>>, vector<20x512xf32>
    %cst = arith.constant dense<0.000000e+00> : vector<40x512xf32>
    %2 = tpu.matmul %0, %1, %cst {dimension_numbers = #tpu.dot_dimension_numbers<[1], [0], [0], [1], [0, 0, 1, 1], [], []>} : vector<40x20xf32>, vector<20x512xf32>, vector<40x512xf32> -> vector<40x512xf32>
    %c0_3 = arith.constant 0 : index
    %c0_4 = arith.constant 0 : index
    %3 = vector.load %arg3[%c0_3, %c0_4] : memref<40x1xf32, #tpu.memory_space<vmem>>, vector<40x1xf32>
    %4 = vector.broadcast %3 : vector<40x1xf32> to vector<40x512xf32>
    %5 = arith.addf %2, %4 : vector<40x512xf32>
    %c0_5 = arith.constant 0 : index
    %c0_6 = arith.constant 0 : index
    %6 = vector.load %arg4[%c0_5, %c0_6] : memref<40x512xf32, #tpu.memory_space<vmem>>, vector<40x512xf32>
    tpu.vector_store %arg4[%c0_5, %c0_6], %5 {strides = array<i32>} : memref<40x512xf32, #tpu.memory_space<vmem>>, vector<40x512xf32>,
    return
  }
  func.func @transform_0(%arg0: i32) -> (i32, i32) {
    %c0_i32 = arith.constant 0 : i32
    %c0_i32_0 = arith.constant 0 : i32
    return %c0_i32, %arg0 : i32, i32
  }
  func.func @transform_1(%arg0: i32) -> (i32, i32) {
    %c0_i32 = arith.constant 0 : i32
    %c0_i32_0 = arith.constant 0 : i32
    %c0_i32_1 = arith.constant 0 : i32
    return %c0_i32, %c0_i32_0 : i32, i32
  }
  func.func @transform_2(%arg0: i32) -> (i32, i32) {
    %c0_i32 = arith.constant 0 : i32
    %c0_i32_0 = arith.constant 0 : i32
    %c0_i32_1 = arith.constant 0 : i32
    return %c0_i32, %c0_i32_0 : i32, i32
  }
  func.func @transform_3(%arg0: i32) -> (i32, i32) {
    %c0_i32 = arith.constant 0 : i32
    %c0_i32_0 = arith.constant 0 : i32
    return %c0_i32, %arg0 : i32, i32
  }
}

</mosaic_0001>

<bundles_post_ra>
// kernel: tpu_custom_call.1
= control target key start
LH: loop header
LB: loop body
LE: loop exit
PB: predicated region body
PF: predicated region fallthrough
CT: control target
= control target key end

     0   :  { %vm78_vm0 = vcmask 1043456   ;;  %vm62_vm1 = vcmask 162816   ;;  %v360_v13 = vmov 0.0   ;;  %s464_s0 = inlined_call_operand.vmem [shape: f32[20,512], index: 0, kind: input, shape index: {}]   ;;  %s465_s1 = inlined_call_operand.vmem [shape: f32[40,20], index: 1, kind: input, shape index: {}]   ;;  %s466_s2 = inlined_call_operand.vmem [shape: f32[40,1], index: 2, kind: input, shape index: {}]   ;;  %s467_s3 = inlined_call_operand.hbm [shape: f32[40,512], index: 3, kind: output, shape index: {}]  }
   0x1   :  { %v29_v0 = vld [vmem:[%s464_s0 + $0x48] sm:$0xf]  ;;  %v31_v1 = vld [vmem:[%s464_s0 + $0x58] sm:$0xf]  ;;  %v28_v3 = vld [vmem:[%s464_s0 + $0x40] sm:$0xf]  ;;  %155 = vmatprep.mubr.f32.mxu0 %v360_v13  ;;  %250 = vmatprep.mubr.f32.mxu1 %v360_v13 }
   0x2   :  { %v25_v2 = vld [vmem:[%s464_s0 + $0x28] sm:$0xff]  ;;  %317 = vmatprep.subr.msk.mxu0 %vm78_vm0, %v29_v0  ;;  %324 = vmatprep.subr.msk.mxu1 %vm78_vm0, %v31_v1  ;;  %v30_v4 = vld [vmem:[%s464_s0 + $0x50] sm:$0xf]  ;;  %v27_v5 = vld [vmem:[%s464_s0 + $0x38] sm:$0xff] }
   0x3   :  { %318 = vmatpush1.msk.msra.mxu0 %vm78_vm0, %v28_v3  ;;  %325 = vmatpush1.msk.msra.mxu1 %vm78_vm0, %v30_v4  ;;  %v24_v6 = vld [vmem:[%s464_s0 + $0x20] sm:$0xff]  ;;  %v26_v7 = vld [vmem:[%s464_s0 + $0x30] sm:$0xff]  ;;  %v21_v8 = vld [vmem:[%s464_s0 + $0x8] sm:$0xff] }
   0x4   :  { %119 = vmatprep.subr.mxu0 %v25_v2  ;;  %214 = vmatprep.subr.mxu1 %v27_v5  ;;  %v23_v9 = vld [vmem:[%s464_s0 + $0x18] sm:$0xff]  ;;  %v20_v10 = vld [vmem:[%s464_s0] sm:$0xff]  ;;  %v22_v11 = vld [vmem:[%s464_s0 + $0x10] sm:$0xff] }
   0x5   :  { %120 = vmatpush1.msra.mxu0 %v24_v6  ;;  %215 = vmatpush1.msra.mxu1 %v26_v7  ;;  %v15_v12 = vld [vmem:[%s465_s1] sm:$0xff] }
   0x6   :  { %121 = vmatprep.subr.mxu0 %v21_v8  ;;  %216 = vmatprep.subr.mxu1 %v23_v9 }
   0x7   :  { %122 = vmatpush1.msra.mxu0 %v20_v10  ;;  %217 = vmatpush1.msra.mxu1 %v22_v11 }
   0x8   :  { %8 = vsyncpa [#allocation3], 0  ;;  %319 = vmatmul.mubr.msk.f32.vlgmr.msra.gmra.mxu0 %vm62_vm1, %v15_v12  ;;  %326 = vmatmul.mubr.msk.f32.vlgmr.msra.gmra.mxu1 %vm62_vm1, %v15_v12  ;;  %v32_v14 = vld [vmem:[%s466_s2] sm:$0xff]  ;;  %v34_v15 = vld [vmem:[%s466_s2 + $0x10] sm:$0xff]  ;;  %v361_v17 = vmov 0  }
   0x9   :  { %161 = vmatprep.mubr.f32.mxu0 %v360_v13  ;;  %256 = vmatprep.mubr.f32.mxu1 %v360_v13  ;;  %v16_v16 = vld [vmem:[%s465_s1 + $0x8] sm:$0xff]  ;;  %v35_v19 = vld [vmem:[%s466_s2 + $0x18] sm:$0xff]  ;;  %v17_v20 = vld [vmem:[%s465_s1 + $0x10] sm:$0xff] }
   0xa   :  { %336 = vset.pattern.permute.xlu0 %v361_v17  ;;  %337 = vset.pattern.permute.xlu1 %v361_v17  ;;  %v33_v18 = vld [vmem:[%s466_s2 + $0x8] sm:$0xff]  ;;  %v36_v21 = vld [vmem:[%s466_s2 + $0x20] sm:$0xff]  ;;  %v18_v22 = vld [vmem:[%s465_s1 + $0x18] sm:$0xff] }
   0xb   :  { %39 = vperm.xlu0 %336, %v32_v14   ;;  %49 = vperm.xlu1 %337, %v34_v15   ;;  %v19_v23 = vld [vmem:[%s465_s1 + $0x20] sm:$0xff]  ;;  %s362_s1 = smov [#allocation2]  }
   0xc   :  { %320 = vmatmul.mubr.msk.f32.gmra.mxu0 %vm62_vm1, %v16_v16  ;;  %327 = vmatmul.mubr.msk.f32.gmra.mxu1 %vm62_vm1, %v16_v16  ;;  %s306_s2 = sshll.u32 %s362_s1, 4  ;;  %s307_s2 = int_to_ptr.vmem [resolvable:$true] %s306_s2 }
   0xd   :  { %167 = vmatprep.mubr.f32.mxu0 %v360_v13  ;;  %262 = vmatprep.mubr.f32.mxu1 %v360_v13  ;;  %s338_s28 = scalar_lea.vmem %s307_s2, 2560  ;;  %p343_p1 = scmp.lt.s32.totalorder %s307_s2, %s307_s2 }
   0xe   :  { %p339_p0 = scmp.ne.s32.totalorder %s307_s2, %s338_s28  ;;  %p344_p2 = scmp.lt.s32.totalorder %s338_s28, %s338_s28 }
   0xf   :  { %44 = vperm.xlu0 %336, %v33_v18   ;;  %54 = vperm.xlu1 %337, %v35_v19  }
  0x10   :  { %321 = vmatmul.mubr.msk.f32.gmra.mxu0 %vm62_vm1, %v17_v20  ;;  %328 = vmatmul.mubr.msk.f32.gmra.mxu1 %vm62_vm1, %v17_v20  ;;  %p345_p3 = por %p344_p2, %p343_p1 }
  0x11   :  { %173 = vmatprep.mubr.f32.mxu0 %v360_v13  ;;  %268 = vmatprep.mubr.f32.mxu1 %v360_v13 }
  0x12   :  { %p346_p4 = pnand %p345_p3, %p339_p0 }
  0x13   :  { %59 = vperm.xlu0 %336, %v36_v21  }
  0x14   :  { %322 = vmatmul.mubr.msk.f32.gmra.mxu0 %vm62_vm1, %v18_v22  ;;  %329 = vmatmul.mubr.msk.f32.gmra.mxu1 %vm62_vm1, %v18_v22 }
  0x15   :  { %179 = vmatprep.mubr.f32.mxu0 %v360_v13  ;;  %274 = vmatprep.mubr.f32.mxu1 %v360_v13 }
  0x18   :  { %323 = vmatmul.mubr.msk.f32.gmra.mxu0 %vm62_vm1, %v19_v23  ;;  %330 = vmatmul.mubr.msk.f32.gmra.mxu1 %vm62_vm1, %v19_v23 }
  0x86   :  { %v40_v24 = vpop.permute.xlu0 %39  ;;  %v50_v34 = vpop.permute.xlu1 %49 }
  0x8a   :  { %v45_v29 = vpop.permute.xlu0 %44  ;;  %v55_v47 = vpop.permute.xlu1 %54 }
  0x8e   :  { %v60_v58 = vpop.permute.xlu0 %59 }
  0xc8   :  { %v157_v25 = vpop.f32.mrf.mxu0  ;;  %v252_v26 = vpop.f32.mrf.mxu1 }
  0xc9   :  { %v158_v27 = vadd.f32 %v157_v25, %v40_v24  ;;  %v253_v28 = vadd.f32 %v252_v26, %v40_v24 }
  0xca   :  { %v159_v30 = vpop.f32.mrf.mxu0  ;;  %v254_v31 = vpop.f32.mrf.mxu1 }
  0xcb   :  { %281 = vst [vmem:[#allocation2] sm:$0xff] %v158_v27  ;;  %283 = vst [vmem:[#allocation2 + $0x10] sm:$0xff] %v253_v28  ;;  %v160_v32 = vadd.f32 %v159_v30, %v40_v24  ;;  %v255_v33 = vadd.f32 %v254_v31, %v40_v24 }
  0xcc   :  { %v163_v35 = vpop.f32.mrf.mxu0  ;;  %v258_v36 = vpop.f32.mrf.mxu1 }
  0xcd   :  { %282 = vst [vmem:[#allocation2 + $0x8] sm:$0xff] %v160_v32  ;;  %284 = vst [vmem:[#allocation2 + $0x18] sm:$0xff] %v255_v33  ;;  %v164_v37 = vadd.f32 %v163_v35, %v45_v29  ;;  %v259_v38 = vadd.f32 %v258_v36, %v45_v29 }
  0xce   :  { %v165_v39 = vpop.f32.mrf.mxu0  ;;  %v260_v40 = vpop.f32.mrf.mxu1 }
  0xcf   :  { %285 = vst [vmem:[#allocation2 + $0x20] sm:$0xff] %v164_v37  ;;  %287 = vst [vmem:[#allocation2 + $0x30] sm:$0xff] %v259_v38  ;;  %v166_v41 = vadd.f32 %v165_v39, %v45_v29  ;;  %v261_v42 = vadd.f32 %v260_v40, %v45_v29 }
  0xd0   :  { %v169_v43 = vpop.f32.mrf.mxu0  ;;  %v264_v44 = vpop.f32.mrf.mxu1 }
  0xd1   :  { %286 = vst [vmem:[#allocation2 + $0x28] sm:$0xff] %v166_v41  ;;  %288 = vst [vmem:[#allocation2 + $0x38] sm:$0xff] %v261_v42  ;;  %v170_v45 = vadd.f32 %v169_v43, %v50_v34  ;;  %v265_v46 = vadd.f32 %v264_v44, %v50_v34 }
  0xd2   :  { %v171_v48 = vpop.f32.mrf.mxu0  ;;  %v266_v49 = vpop.f32.mrf.mxu1 }
  0xd3   :  { %289 = vst [vmem:[#allocation2 + $0x40] sm:$0xff] %v170_v45  ;;  %291 = vst [vmem:[#allocation2 + $0x50] sm:$0xff] %v265_v46  ;;  %v172_v50 = vadd.f32 %v171_v48, %v50_v34  ;;  %v267_v51 = vadd.f32 %v266_v49, %v50_v34 }
  0xd4   :  { %v175_v52 = vpop.f32.mrf.mxu0  ;;  %v270_v53 = vpop.f32.mrf.mxu1 }
  0xd5   :  { %290 = vst [vmem:[#allocation2 + $0x48] sm:$0xff] %v172_v50  ;;  %292 = vst [vmem:[#allocation2 + $0x58] sm:$0xff] %v267_v51  ;;  %v176_v54 = vadd.f32 %v175_v52, %v55_v47  ;;  %v271_v55 = vadd.f32 %v270_v53, %v55_v47 }
  0xd6   :  { %v177_v56 = vpop.f32.mrf.mxu0  ;;  %v272_v57 = vpop.f32.mrf.mxu1 }
  0xd7   :  { %293 = vst [vmem:[#allocation2 + $0x60] sm:$0xff] %v176_v54  ;;  %295 = vst [vmem:[#allocation2 + $0x70] sm:$0xff] %v271_v55  ;;  %v178_v59 = vadd.f32 %v177_v56, %v55_v47  ;;  %v273_v60 = vadd.f32 %v272_v57, %v55_v47 }
  0xd8   :  { %v181_v61 = vpop.f32.mrf.mxu0  ;;  %v276_v62 = vpop.f32.mrf.mxu1 }
  0xd9   :  { %294 = vst [vmem:[#allocation2 + $0x68] sm:$0xff] %v178_v59  ;;  %296 = vst [vmem:[#allocation2 + $0x78] sm:$0xff] %v273_v60  ;;  %v182_v63 = vadd.f32 %v181_v61, %v60_v58  ;;  %v277_v0 = vadd.f32 %v276_v62, %v60_v58 }
  0xda   :  { %v183_v1 = vpop.f32.mrf.mxu0  ;;  %v278_v2 = vpop.f32.mrf.mxu1 }
  0xdb   :  { %297 = vst [vmem:[#allocation2 + $0x80] sm:$0xff] %v182_v63  ;;  %299 = vst [vmem:[#allocation2 + $0x90] sm:$0xff] %v277_v0  ;;  %v184_v3 = vadd.f32 %v183_v1, %v60_v58  ;;  %v279_v4 = vadd.f32 %v278_v2, %v60_v58 }
  0xdd   :  { %298 = vst [vmem:[#allocation2 + $0x88] sm:$0xff] %v184_v3  ;;  %300 = vst [vmem:[#allocation2 + $0x98] sm:$0xff] %v279_v4 }
  0xde   :  { %349 = shalt.err (!%p346_p4)
}
  0xdf   :  { %s363_s29 = smov 512   ;;  %s364_s30 = smov 32  }
  0xe0   :  { %312 = dma.vmem_to_hbm [thread:$0]  %s307_s2, 2560, %s467_s3, [#allocation3], %s363_s29, %s363_s29, %s364_s30  }
  0xe1   :  { %358 = dma.done.wait [#allocation3], 2560  }
  0xe2   :  { %359 = vsyncadd [#allocation3], 4294964736 }
  0xe3   :  { %316 = vsyncpa [#allocation3], 1 }

</bundles_post_ra>
